<compile_context>
chip_gen: v6e
topology: v6e:2x2x1
jax: 0.10.0
libtpu: 0.0.40
codegen_flags: <defaults>
</compile_context>

<pallas_src>
import functools

import jax
import jax.numpy as jnp
from jax import lax
from jax.experimental import pallas as pl
from jax.experimental.pallas import tpu as pltpu

_SUBLANE = 8           # f32 sublane (second-to-last-dim alignment target)
_VMEM_BUDGET = 24 * 1024 * 1024   # stay under v7x's 32 MiB default scoped VMEM
_TINY_BATCH = 256      # below this, plain XLA beats pallas_call dispatch cost


def _round_up(x, m):
    return ((x + m - 1) // m) * m


def linear_kernel(x_ref, w_ref, b_ref, o_ref, *, precision):
    """o = x @ W^T + b  (nn.Linear.forward semantics), no in-kernel transpose."""
    x = x_ref[...]                      # [TB, S]
    w = w_ref[...]                      # [A, S]  (resident: constant index_map)
    b = b_ref[...]                      # [1, A]  (broadcasts over batch rows)
    # Contract x's dim 1 with w's dim 1: MXU-friendly, no w.T relayout.
    acc = lax.dot_general(
        x, w,
        dimension_numbers=(((1,), (1,)), ((), ())),
        preferred_element_type=jnp.float32,
        precision=precision,
    )                                   # [TB, A] in f32
    o_ref[...] = (acc + b).astype(o_ref.dtype)


@functools.partial(jax.jit,
                   static_argnames=("block_batch", "use_pallas", "precision"))
def qnetwork_forward(state, weight, bias, *, block_batch=2048, use_pallas=None,
                     precision=lax.Precision.HIGHEST):
    """Pallas equivalent of QNetwork.forward(state) = fc1(state)."""
    B, S = state.shape
    A, S2 = weight.shape
    assert S == S2 and bias.shape == (A,)

    if use_pallas is None:
        use_pallas = B >= _TINY_BATCH
    if not use_pallas:
        # Tiny-shape fast path: a few hundred FLOPs; kernel dispatch would
        # dominate on every TPU generation.
        return lax.dot_general(state, weight, (((1,), (1,)), ((), ())),
                               precision=precision) + bias

    # --- batch tile selection ------------------------------------------------
    # Aim for >= 2 grid steps (so v7x's two TensorCores both get work; neutral
    # on single-TC v5e/v6e), but never exceed block_batch.
    TB = min(block_batch, max(_SUBLANE, _round_up(pl.cdiv(B, 2), _SUBLANE)))
    # Clamp against the VMEM budget: double-buffered x tile + out tile, plus
    # the resident (double-buffered) weight/bias.  Keeps the same code safe on
    # v7x's 64 MiB VMEM even if state_size grows large.
    resident_bytes = 2 * (A * S + A) * 4
    bytes_per_row = 2 * (S + A) * 4
    max_tb = max(_SUBLANE,
                 ((_VMEM_BUDGET - resident_bytes) // bytes_per_row)
                 // _SUBLANE * _SUBLANE)
    TB = min(TB, max_tb)

    grid = (pl.cdiv(B, TB),)            # ragged last tile handled by Pallas
    bias2d = bias.reshape(1, A)         # trivial; no padding of W / b needed

    cost = pl.CostEstimate(
        flops=2 * B * S * A,
        transcendentals=0,
        bytes_accessed=(B * S + A * S + A + B * A) * 4,
    )

    out = pl.pallas_call(
        functools.partial(linear_kernel, precision=precision),
        out_shape=jax.ShapeDtypeStruct((B, A), jnp.float32),
        grid=grid,
        in_specs=[
            # batch tile of the states (last dim = full S -> legal block shape)
            pl.BlockSpec((TB, S), lambda i: (i, 0),
                         memory_space=pltpu.MemorySpace.VMEM),
            # weight: constant index_map -> DMA'd once, stays resident in VMEM
            pl.BlockSpec((A, S), lambda i: (0, 0),
                         memory_space=pltpu.MemorySpace.VMEM),
            # bias row
            pl.BlockSpec((1, A), lambda i: (0, 0),
                         memory_space=pltpu.MemorySpace.VMEM),
        ],
        # Un-padded output: block last dim equals the full action dim, so the
        # (8,128) rule is satisfied and writeback is only B*A*4 bytes.
        out_specs=pl.BlockSpec((TB, A), lambda i: (i, 0),
                               memory_space=pltpu.MemorySpace.VMEM),
        compiler_params=pltpu.CompilerParams(
            # batch axis is independent -> shard across TCs on v7x megacore
            dimension_semantics=("parallel",),
            vmem_limit_bytes=32 * 1024 * 1024,
        ),
        cost_estimate=cost,
    )(state, weight, bias2d)

    return out


def init_qnetwork_params(key, state_size, action_size):
    """Deterministic init mimicking nn.Linear's default (uniform +/- 1/sqrt(fan_in))."""
    kw, kb = jax.random.split(key)
    bound = 1.0 / jnp.sqrt(jnp.float32(state_size))
    weight = jax.random.uniform(
        kw, (action_size, state_size), jnp.float32, minval=-bound, maxval=bound)
    bias = jax.random.uniform(
        kb, (action_size,), jnp.float32, minval=-bound, maxval=bound)
    return weight, bias


if __name__ == "__main__":
    key = jax.random.PRNGKey(0)
    k_state, k_state_big, k_params = jax.random.split(key, 3)

    batch = 8
    state_size = 37      # Banana-collector environment state size
    action_size = 4      # Banana-collector environment action size

    weight, bias = init_qnetwork_params(k_params, state_size, action_size)

    def reference(x):
        return lax.dot_general(x, weight, (((1,), (1,)), ((), ())),
                               precision=lax.Precision.HIGHEST) + bias

    # Small-shape run: force the Pallas path so the kernel itself is exercised.
    state = jax.random.normal(k_state, (batch, state_size), jnp.float32)
    out = qnetwork_forward(state, weight, bias, use_pallas=True)
    out = jax.block_until_ready(out)
    assert out.shape == (batch, action_size)
    assert jnp.allclose(out, reference(state), atol=1e-5, rtol=1e-5)

    # Larger ragged-batch run: exercises a multi-step grid and the clipped
    # (ragged) last tile whose discarded OOB rows must not affect valid rows.
    big_batch = 4100
    state_big = jax.random.normal(k_state_big, (big_batch, state_size), jnp.float32)
    out_big = qnetwork_forward(state_big, weight, bias, use_pallas=True)
    out_big = jax.block_until_ready(out_big)
    assert out_big.shape == (big_batch, action_size)
    assert jnp.allclose(out_big, reference(state_big), atol=1e-5, rtol=1e-5)

    print("KERNEL_OK")
</pallas_src>

<mosaic_0001>
module attributes {stable_mosaic.version = 11 : i64} {
  func.func @linear_kernel(%arg0: i32, %arg1: memref<8x37xf32, #tpu.memory_space<vmem>>, %arg2: memref<4x37xf32, #tpu.memory_space<vmem>>, %arg3: memref<1x4xf32, #tpu.memory_space<vmem>>, %arg4: memref<8x4xf32, #tpu.memory_space<vmem>>) attributes {dimension_semantics = [#tpu.dimension_semantics<parallel>], iteration_bounds = array<i64: 1>, scalar_prefetch = 0 : i64, scratch_operands = 0 : i64, tpu.core_type = #tpu.core_type<tc>, window_params = [{transform_indices = @transform_0, window_bounds = array<i64: 8, 37>}, {pipeline_mode = #tpu.pipeline_mode<synchronous>, transform_indices = @transform_1, window_bounds = array<i64: 4, 37>}, {pipeline_mode = #tpu.pipeline_mode<synchronous>, transform_indices = @transform_2, window_bounds = array<i64: 1, 4>}, {transform_indices = @transform_3, window_bounds = array<i64: 8, 4>}]} {
    %c0 = arith.constant 0 : index
    %c0_0 = arith.constant 0 : index
    %0 = vector.load %arg1[%c0, %c0_0] : memref<8x37xf32, #tpu.memory_space<vmem>>, vector<8x37xf32>
    %c0_1 = arith.constant 0 : index
    %c0_2 = arith.constant 0 : index
    %1 = vector.load %arg2[%c0_1, %c0_2] : memref<4x37xf32, #tpu.memory_space<vmem>>, vector<4x37xf32>
    %c0_3 = arith.constant 0 : index
    %c0_4 = arith.constant 0 : index
    %2 = vector.load %arg3[%c0_3, %c0_4] : memref<1x4xf32, #tpu.memory_space<vmem>>, vector<1x4xf32>
    %cst = arith.constant dense<0.000000e+00> : vector<8x4xf32>
    %3 = tpu.matmul %0, %1, %cst {dimension_numbers = #tpu.dot_dimension_numbers<[1], [1], [0], [0], [0, 0, 1, 0], [], []>, precision = #tpu.contract_precision<fp32>} : vector<8x37xf32>, vector<4x37xf32>, vector<8x4xf32> -> vector<8x4xf32>
    %4 = vector.broadcast %2 : vector<1x4xf32> to vector<8x4xf32>
    %5 = arith.addf %3, %4 : vector<8x4xf32>
    %c0_5 = arith.constant 0 : index
    %c0_6 = arith.constant 0 : index
    %6 = vector.load %arg4[%c0_5, %c0_6] : memref<8x4xf32, #tpu.memory_space<vmem>>, vector<8x4xf32>
    tpu.vector_store %arg4[%c0_5, %c0_6], %5 {strides = array<i32>} : memref<8x4xf32, #tpu.memory_space<vmem>>, vector<8x4xf32>,
    return
  }
  func.func @transform_0(%arg0: i32) -> (i32, i32) {
    %c0_i32 = arith.constant 0 : i32
    %c0_i32_0 = arith.constant 0 : i32
    return %arg0, %c0_i32 : i32, i32
  }
  func.func @transform_1(%arg0: i32) -> (i32, i32) {
    %c0_i32 = arith.constant 0 : i32
    %c0_i32_0 = arith.constant 0 : i32
    %c0_i32_1 = arith.constant 0 : i32
    return %c0_i32, %c0_i32_0 : i32, i32
  }
  func.func @transform_2(%arg0: i32) -> (i32, i32) {
    %c0_i32 = arith.constant 0 : i32
    %c0_i32_0 = arith.constant 0 : i32
    %c0_i32_1 = arith.constant 0 : i32
    return %c0_i32, %c0_i32_0 : i32, i32
  }
  func.func @transform_3(%arg0: i32) -> (i32, i32) {
    %c0_i32 = arith.constant 0 : i32
    %c0_i32_0 = arith.constant 0 : i32
    return %arg0, %c0_i32 : i32, i32
  }
}

</mosaic_0001>

<bundles_post_ra>
// kernel: qnetwork_forward.1
= control target key start
LH: loop header
LB: loop body
LE: loop exit
PB: predicated region body
PF: predicated region fallthrough
CT: control target
= control target key end

     0   :  { %8 = vsyncpa [#allocation3], 0  ;;  %s641_s0 = inlined_call_operand.hbm [shape: f32[8,37], index: 0, kind: input, shape index: {}]   ;;  %s642_s1 = inlined_call_operand.hbm [shape: f32[4,37], index: 1, kind: input, shape index: {}]   ;;  %s643_s2 = inlined_call_operand.vmem [shape: f32[1,4], index: 2, kind: input, shape index: {}]   ;;  %s644_s3 = inlined_call_operand.vmem [shape: f32[8,4], index: 3, kind: output, shape index: {}]  }
   0x1   :  { %9 = vsyncpa [#allocation5], 0  ;;  %s599_s12 = smov [#allocation2]   ;;  %s600_s14 = smov [#allocation4]  }
   0x2   :  { %s16_s13 = sshll.u32 %s599_s12, 4  ;;  %s26_s15 = sshll.u32 %s600_s14, 4  ;;  %s17_s13 = int_to_ptr.vmem [resolvable:$true] %s16_s13  ;;  %s27_s15 = int_to_ptr.vmem [resolvable:$true] %s26_s15 }
   0x3   :  { %s563_s16 = scalar_lea.vmem %s17_s13, 128  ;;  %p568_p1 = scmp.lt.s32.totalorder %s17_s13, %s17_s13 }
   0x4   :  { %p564_p0 = scmp.ne.s32.totalorder %s17_s13, %s563_s16  ;;  %p569_p2 = scmp.lt.s32.totalorder %s563_s16, %s563_s16 }
   0x6   :  { %p570_p3 = por %p569_p2, %p568_p1 }
   0x8   :  { %p571_p4 = pnand %p570_p3, %p564_p0 }
   0xa   :  { %574 = shalt.err (!%p571_p4)
}
   0xb   :  { %19 = dma.hbm_to_vmem [thread:$0]  %s641_s0, 128, %s17_s13, [#allocation3]  }
   0xc   :  { %s583_s19 = scalar_lea.vmem %s27_s15, 64  ;;  %p588_p6 = scmp.lt.s32.totalorder %s27_s15, %s27_s15 }
   0xd   :  { %p584_p5 = scmp.ne.s32.totalorder %s27_s15, %s583_s19  ;;  %p589_p7 = scmp.lt.s32.totalorder %s583_s19, %s583_s19 }
   0xf   :  { %p590_p8 = por %p589_p7, %p588_p6 }
  0x11   :  { %p591_p9 = pnand %p590_p8, %p584_p5 }
  0x13   :  { %594 = shalt.err (!%p591_p9)
}
  0x14   :  { %29 = dma.hbm_to_vmem [thread:$0]  %s642_s1, 64, %s27_s15, [#allocation5]  }
  0x15   :  { %595 = dma.done.wait [#allocation3], 128  }
  0x16   :  { %596 = vsyncadd [#allocation3], 4294967168 }
  0x17   :  { %597 = dma.done.wait [#allocation5], 64  }
  0x18   :  { %598 = vsyncadd [#allocation5], 4294967232  ;;  %v601_v0 = vmov 0.0   ;;  %vm602_vm0 = vmmov 0   ;;  %vm47_vm1 = vcmask 302080   ;;  %v38_v2 = vld [vmem:[#allocation2] sm:$0xff] }
  0x19   :  { %521 = vmatprep.subr.mxu0 %v601_v0  ;;  %523 = vmatprep.mubr.msk.f32.mxu0 %vm602_vm0, %v601_v0  ;;  %v39_v1 = vld [vmem:[#allocation4] sm:$0xf]  ;;  %v49_v4 = vsel %vm47_vm1, %v38_v2, 0  ;;  %v508_v15 = vld [vmem:[%s643_s2] ss:$0 sm:$0xff]  ;;  %vm500_vm2 = vcmask 31744  }
  0x1a   :  { %526 = vmatprep.subr.mxu1 %v601_v0  ;;  %528 = vmatprep.mubr.msk.f32.mxu1 %vm602_vm0, %v601_v0  ;;  %v52_v3 = vsel %vm47_vm1, %v39_v1, 0  ;;  %v120_v6 = vand.u32 4294901760, %v49_v4 }
  0x1b   :  { %v85_v5 = vand.u32 4294901760, %v52_v3 }
  0x1c   :  { %v121_v7 = vsub.f32 %v49_v4, %v120_v6 }
  0x1d   :  { %522 = vmatpush3.xpose.msra.mxu0 %v85_v5  ;;  %v162_v8 = vsub.f32 %v52_v3, %v85_v5 }
  0x1e   :  { %531 = vmatprep.subr.mxu0 %v601_v0  ;;  %v122_v9 = vand.u32 4294901760, %v121_v7 }
  0x1f   :  { %v163_v10 = vand.u32 4294901760, %v162_v8 }
  0x20   :  { %v123_v11 = vsub.f32 %v121_v7, %v122_v9 }
  0x21   :  { %v164_v12 = vsub.f32 %v162_v8, %v163_v10 }
  0x22   :  { %v124_v13 = vand.u32 4294901760, %v123_v11 }
  0x23   :  { %v165_v14 = vand.u32 4294901760, %v164_v12 }
  0x24   :  { %524 = vmatmul.mubr.f32.vlgmr.msra.gmra.mxu0 %v124_v13 }
  0x25   :  { %527 = vmatpush3.xpose.msra.mxu1 %v165_v14  ;;  %532 = vmatpush3.xpose.msra.mxu0 %v162_v8 }
  0x26   :  { %533 = vmatprep.mubr.msk.f32.mxu0 %vm602_vm0, %v601_v0  ;;  %536 = vmatprep.subr.mxu1 %v601_v0 }
  0x27   :  { %541 = vmatprep.subr.mxu0 %v601_v0 }
  0x28   :  { %529 = vmatmul.mubr.f32.vlgmr.msra.gmra.mxu1 %v120_v6  ;;  %534 = vmatmul.mubr.f32.vlgmr.msra.gmra.mxu0 %v121_v7 }
  0x29   :  { %537 = vmatpush3.xpose.msra.mxu1 %v85_v5  ;;  %542 = vmatpush3.xpose.msra.mxu0 %v163_v10 }
  0x2a   :  { %538 = vmatprep.mubr.msk.f32.mxu1 %vm602_vm0, %v601_v0  ;;  %543 = vmatprep.mubr.msk.f32.mxu0 %vm602_vm0, %v601_v0 }
  0x2b   :  { %546 = vmatprep.subr.mxu1 %v601_v0 }
  0x2c   :  { %539 = vmatmul.mubr.f32.vlgmr.msra.gmra.mxu1 %v122_v9  ;;  %544 = vmatmul.mubr.f32.vlgmr.msra.gmra.mxu0 %v120_v6 }
  0x2d   :  { %547 = vmatpush3.xpose.msra.mxu1 %v85_v5  ;;  %548 = vmatprep.mubr.msk.f32.mxu1 %vm602_vm0, %v601_v0 }
  0x30   :  { %549 = vmatmul.mubr.f32.vlgmr.msra.gmra.mxu1 %v120_v6 }
  0xe4   :  { %v126_v16 = vpop.f32.mrf.mxu0 }
  0xe5   :  { %v127_v17 = vadd.f32 %v508_v15, %v126_v16 }
  0xe6   :  { %v525_v18 = vpop.f32.mrf.mxu0 }
  0xe8   :  { %v202_v19 = vpop.f32.mrf.mxu1  ;;  %v276_v21 = vpop.f32.mrf.mxu0 }
  0xe9   :  { %v203_v20 = vadd.f32 %v202_v19, %v127_v17 }
  0xea   :  { %v530_v22 = vpop.f32.mrf.mxu1  ;;  %v535_v24 = vpop.f32.mrf.mxu0 }
  0xeb   :  { %v277_v23 = vadd.f32 %v276_v21, %v203_v20 }
  0xec   :  { %v350_v25 = vpop.f32.mrf.mxu1  ;;  %v424_v27 = vpop.f32.mrf.mxu0 }
  0xed   :  { %v351_v26 = vadd.f32 %v350_v25, %v277_v23 }
  0xee   :  { %v540_v28 = vpop.f32.mrf.mxu1  ;;  %v545_v30 = vpop.f32.mrf.mxu0 }
  0xef   :  { %v425_v29 = vadd.f32 %v424_v27, %v351_v26 }
  0xf0   :  { %v496_v31 = vpop.f32.mrf.mxu1 }
  0xf1   :  { %v497_v32 = vadd.f32 %v496_v31, %v425_v29 }
  0xf2   :  { %v550_v33 = vpop.f32.mrf.mxu1 }
  0xf3   :  { %501 = vst.msk [vmem:[%s644_s3] sm:$0xff] %vm500_vm2, %v497_v32 }
  0xf4   :  { %506 = vsyncpa [#allocation3], 1 }
  0xf5   :  { %507 = vsyncpa [#allocation5], 1 }

</bundles_post_ra>
